<compile_context>
chip_gen: v5e
topology: v5e:2x2
jax: 0.10.0
libtpu: 0.0.40
codegen_flags: <defaults>
</compile_context>

<pallas_src>
import functools

import jax
import jax.numpy as jnp
import numpy as np
from jax.experimental import pallas as pl
from jax.experimental.pallas import tpu as pltpu

_CHUNK = 128  # time-chunk width on the lane axis (multiple of 128)


def _actor_ppo_loss_kernel(packed_ref, gmat_ref, out_ref,
                           data_ref, disc_ref, carry_ref, mean_ref, var_ref,
                           loss_ref,
                           *, T, C, n_chunks, gamma, ent_coef, eps):
    p = pl.program_id(0)   # phase: 0 = reverse discounted scan, 1 = PPO loss
    j = pl.program_id(1)   # position along the chunk axis

    lane = jax.lax.broadcasted_iota(jnp.int32, (1, C), 1)
    inv_T = 1.0 / T

    @pl.when(jnp.logical_and(p == 0, j == 0))
    def _init():
        carry_ref[...] = jnp.zeros_like(carry_ref)
        mean_ref[...] = jnp.zeros_like(mean_ref)
        var_ref[...] = jnp.zeros_like(var_ref)
        loss_ref[...] = jnp.zeros_like(loss_ref)

    @pl.when(p == 0)
    def _scan_phase():
        c = n_chunks - 1 - j                 # physical chunk index (last -> first)
        data = packed_ref[...]               # (8, C): the only HBM read per chunk
        r = data[0:1, :]                     # rewards (zero past T)

        # In-chunk weighted suffix sum disc[i] = sum_{k>=i} gamma^(k-i) r[k]
        # against the resident constant triangular gamma matrix (MXU).
        disc = jnp.dot(r, gmat_ref[...], preferred_element_type=jnp.float32)

        # Carry from later (already processed) chunks:
        # disc[i] += gamma^(C - i) * disc[next_chunk_start];
        # gamma^(C - i) == gamma * gmat[C-1, i]  (no per-chunk exp).
        gpow = gamma * gmat_ref[C - 1:C, :]
        disc = disc + gpow * carry_ref[...]

        data_ref[c] = data                   # stash chunk for phase 1 (no re-DMA)
        disc_ref[c] = disc                   # stash discounted rewards
        carry_ref[...] = disc[:, 0:1]        # carry = disc at this chunk's start

        valid = (c * C + lane) < T
        dm = jnp.where(valid, disc, 0.0)
        mean_ref[...] += jnp.sum(dm, axis=(0, 1), keepdims=True)
        var_ref[...] += jnp.sum(dm * dm, axis=(0, 1), keepdims=True)

    @pl.when(p == 1)
    def _loss_phase():
        c = j

        # Finalize mean / inv_std once (unbiased std, matching torch .std()),
        # overwriting the accumulator scratch in place.
        @pl.when(j == 0)
        def _finalize_stats():
            s = mean_ref[...]
            ss = var_ref[...]
            mean = s * inv_T
            var = (ss - jnp.float32(T) * mean * mean) * (1.0 / (T - 1))
            mean_ref[...] = mean
            var_ref[...] = jax.lax.rsqrt(jnp.maximum(var, 0.0))  # EUP rsqrt

        mean = mean_ref[...]
        inv_std = var_ref[...]
        disc_n = (disc_ref[c] - mean) * inv_std   # normalized discounted rewards

        data = data_ref[c]                        # from VMEM stash, no HBM read
        values = data[1:2, :]
        log_probs = data[2:3, :]
        log_probs_prev = data[3:4, :]
        entropies = data[4:5, :]

        advantage = disc_n - values
        ratio = jnp.exp(log_probs - log_probs_prev)
        p1 = ratio * advantage
        p2 = jnp.clip(ratio, 1.0 - eps, 1.0 + eps) * advantage
        contrib = jnp.minimum(p1, p2) + ent_coef * entropies

        valid = (c * C + lane) < T
        new_loss = loss_ref[...] + jnp.sum(jnp.where(valid, contrib, 0.0),
                                           axis=(0, 1), keepdims=True)
        loss_ref[...] = new_loss

        @pl.when(j == n_chunks - 1)
        def _final():
            out_ref[...] = -new_loss * inv_T


def actor_ppo_loss(rewards, values, log_probs, log_probs_prev, entropies,
                   policies=None, ent_coef=0.5, gamma=0.99, eps=0.2):
    """PPO clipped actor loss. Inputs are 1-D length-T arrays (T >= 2).

    `policies` is accepted for signature parity with the PyTorch module but is
    unused by its forward pass.
    """
    del policies  # unused by the reference forward
    T = int(rewards.shape[0])
    C = _CHUNK
    n_chunks = -(-T // C)
    T_pad = n_chunks * C
    f32 = jnp.float32

    # Pack the five per-timestep vectors into one (8, T_pad) array:
    # one DMA per chunk, zero padding past T (pads are masked in the kernel).
    packed = jnp.zeros((8, T_pad), f32)
    packed = packed.at[0, :T].set(rewards.astype(f32))
    packed = packed.at[1, :T].set(values.astype(f32))
    packed = packed.at[2, :T].set(log_probs.astype(f32))
    packed = packed.at[3, :T].set(log_probs_prev.astype(f32))
    packed = packed.at[4, :T].set(entropies.astype(f32))

    # Chunk-local lower-triangular gamma matrix: gmat[k, i] = gamma^(k-i) for
    # k >= i else 0.  Fixed (C, C) = 64 KiB compile-time constant (NOT O(T^2));
    # DMA'd once and resident across the whole grid.
    k_idx = np.arange(C, dtype=np.int64)[:, None]
    i_idx = np.arange(C, dtype=np.int64)[None, :]
    diff = k_idx - i_idx
    gmat_np = np.where(diff >= 0,
                       np.power(float(gamma), np.maximum(diff, 0)),
                       0.0).astype(np.float32)
    gmat = jnp.asarray(gmat_np)

    kernel = functools.partial(
        _actor_ppo_loss_kernel,
        T=T, C=C, n_chunks=n_chunks,
        gamma=float(gamma), ent_coef=float(ent_coef), eps=float(eps))

    def packed_index_map(p, j):
        # Phase 0 walks chunks last -> first (reverse scan).  Phase 1 reads
        # everything from the VMEM stash, so keep the block index constant
        # (== last phase-0 index) => no HBM re-fetches in phase 1.
        return (0, jnp.where(p == 0, n_chunks - 1 - j, 0))

    grid_spec = pltpu.PrefetchScalarGridSpec(
        num_scalar_prefetch=0,
        grid=(2, n_chunks),
        in_specs=[
            pl.BlockSpec((8, C), packed_index_map),
            pl.BlockSpec((C, C), lambda p, j: (0, 0)),   # resident constant
        ],
        out_specs=pl.BlockSpec((1, 1), lambda p, j: (0, 0)),
        scratch_shapes=[
            pltpu.VMEM((n_chunks, 8, C), f32),   # packed chunk stash (phase 1 src)
            pltpu.VMEM((n_chunks, 1, C), f32),   # discounted rewards per chunk
            pltpu.VMEM((1, 1), f32),             # carry across chunks
            pltpu.VMEM((1, 1), f32),             # sum(disc)  -> mean
            pltpu.VMEM((1, 1), f32),             # sum(disc^2)-> inv_std
            pltpu.VMEM((1, 1), f32),             # running loss sum
        ])

    out = pl.pallas_call(
        kernel,
        out_shape=jax.ShapeDtypeStruct((1, 1), f32),
        grid_spec=grid_spec,
        compiler_params=pltpu.CompilerParams(
            # Both axes carry sequential state (scan carry / accumulators).
            dimension_semantics=("arbitrary", "arbitrary"),
            vmem_limit_bytes=32 * 1024 * 1024),
    )(packed, gmat)
    return out[0, 0]


def _reference_loss(rewards, values, log_probs, log_probs_prev, entropies,
                    ent_coef=0.5, gamma=0.99, eps=0.2):
    """Float64 numpy reference mirroring the PyTorch module."""
    r = np.asarray(rewards, np.float64)
    v = np.asarray(values, np.float64)
    lp = np.asarray(log_probs, np.float64)
    lpp = np.asarray(log_probs_prev, np.float64)
    ent = np.asarray(entropies, np.float64)
    T = r.shape[0]
    disc = np.zeros(T, np.float64)
    val = 0.0
    for i in reversed(range(T)):
        val = r[i] + gamma * val
        disc[i] = val
    disc = (disc - disc.mean()) / disc.std(ddof=1)   # torch .std() is unbiased
    adv = disc - v
    ratio = np.exp(lp - lpp)
    p1 = ratio * adv
    p2 = np.clip(ratio, 1.0 - eps, 1.0 + eps) * adv
    return -(np.minimum(p1, p2) + ent_coef * ent).mean()


def _make_inputs(T, key):
    k1, k2, k3, k4, k5 = jax.random.split(key, 5)
    rewards = jax.random.normal(k1, (T,), dtype=jnp.float32)
    values = jax.random.normal(k2, (T,), dtype=jnp.float32)
    log_probs = -jnp.abs(jax.random.normal(k3, (T,), dtype=jnp.float32))
    log_probs_prev = -jnp.abs(jax.random.normal(k4, (T,), dtype=jnp.float32))
    entropies = jnp.abs(jax.random.normal(k5, (T,), dtype=jnp.float32))
    return rewards, values, log_probs, log_probs_prev, entropies


if __name__ == "__main__":
    # Small single-chunk case (matches the module's toy scale).
    args_small = _make_inputs(8, jax.random.PRNGKey(0))
    loss_small = jax.block_until_ready(actor_ppo_loss(*args_small))
    ref_small = _reference_loss(*[np.asarray(a) for a in args_small])
    assert np.allclose(np.asarray(loss_small), ref_small, rtol=1e-4, atol=1e-4), (
        loss_small, ref_small)

    # Multi-chunk case exercising the cross-chunk scan carry (3 chunks of 128).
    args_multi = _make_inputs(300, jax.random.PRNGKey(1))
    loss_multi = jax.block_until_ready(actor_ppo_loss(*args_multi))
    ref_multi = _reference_loss(*[np.asarray(a) for a in args_multi])
    assert np.allclose(np.asarray(loss_multi), ref_multi, rtol=1e-3, atol=1e-3), (
        loss_multi, ref_multi)

    print("KERNEL_OK")
</pallas_src>

<mosaic_0001>
module attributes {stable_mosaic.version = 11 : i64} {
  func.func @_actor_ppo_loss_kernel(%arg0: i32, %arg1: i32, %arg2: memref<8x128xf32, #tpu.memory_space<vmem>>, %arg3: memref<128x128xf32, #tpu.memory_space<vmem>>, %arg4: memref<1x1xf32, #tpu.memory_space<vmem>>, %arg5: memref<1x8x128xf32, #tpu.memory_space<vmem>>, %arg6: memref<1x1x128xf32, #tpu.memory_space<vmem>>, %arg7: memref<1x1xf32, #tpu.memory_space<vmem>>, %arg8: memref<1x1xf32, #tpu.memory_space<vmem>>, %arg9: memref<1x1xf32, #tpu.memory_space<vmem>>, %arg10: memref<1x1xf32, #tpu.memory_space<vmem>>) attributes {dimension_semantics = [#tpu.dimension_semantics<arbitrary>, #tpu.dimension_semantics<arbitrary>], iteration_bounds = array<i64: 2, 1>, scalar_prefetch = 0 : i64, scratch_operands = 6 : i64, tpu.core_type = #tpu.core_type<tc>, window_params = [{transform_indices = @transform_0, window_bounds = array<i64: 8, 128>}, {pipeline_mode = #tpu.pipeline_mode<synchronous>, transform_indices = @transform_1, window_bounds = array<i64: 128, 128>}, {pipeline_mode = #tpu.pipeline_mode<synchronous>, transform_indices = @transform_2, window_bounds = array<i64: 1, 1>}]} {
    %0 = tpu.iota {dimensions = array<i32: 1>} : vector<1x128xi32>
    %c0_i32 = arith.constant 0 : i32
    %1 = arith.cmpi eq, %arg0, %c0_i32 : i32
    %c0_i32_0 = arith.constant 0 : i32
    %2 = arith.cmpi eq, %arg1, %c0_i32_0 : i32
    %3 = arith.andi %1, %2 : i1
    %4 = arith.extui %3 : i1 to i32
    %c0_i32_1 = arith.constant 0 : i32
    %5 = arith.cmpi ne, %4, %c0_i32_1 : i32
    scf.if %5 {
      %cst = arith.constant 0.000000e+00 : f32
      %12 = vector.broadcast %cst : f32 to vector<1x1xf32>
      %c0 = arith.constant 0 : index
      %c0_5 = arith.constant 0 : index
      %13 = vector.load %arg7[%c0, %c0_5] : memref<1x1xf32, #tpu.memory_space<vmem>>, vector<1x1xf32>
      tpu.vector_store %arg7[%c0, %c0_5], %12 {strides = array<i32>} : memref<1x1xf32, #tpu.memory_space<vmem>>, vector<1x1xf32>,
      %cst_6 = arith.constant 0.000000e+00 : f32
      %14 = vector.broadcast %cst_6 : f32 to vector<1x1xf32>
      %c0_7 = arith.constant 0 : index
      %c0_8 = arith.constant 0 : index
      %15 = vector.load %arg8[%c0_7, %c0_8] : memref<1x1xf32, #tpu.memory_space<vmem>>, vector<1x1xf32>
      tpu.vector_store %arg8[%c0_7, %c0_8], %14 {strides = array<i32>} : memref<1x1xf32, #tpu.memory_space<vmem>>, vector<1x1xf32>,
      %cst_9 = arith.constant 0.000000e+00 : f32
      %16 = vector.broadcast %cst_9 : f32 to vector<1x1xf32>
      %c0_10 = arith.constant 0 : index
      %c0_11 = arith.constant 0 : index
      %17 = vector.load %arg9[%c0_10, %c0_11] : memref<1x1xf32, #tpu.memory_space<vmem>>, vector<1x1xf32>
      tpu.vector_store %arg9[%c0_10, %c0_11], %16 {strides = array<i32>} : memref<1x1xf32, #tpu.memory_space<vmem>>, vector<1x1xf32>,
      %cst_12 = arith.constant 0.000000e+00 : f32
      %18 = vector.broadcast %cst_12 : f32 to vector<1x1xf32>
      %c0_13 = arith.constant 0 : index
      %c0_14 = arith.constant 0 : index
      %19 = vector.load %arg10[%c0_13, %c0_14] : memref<1x1xf32, #tpu.memory_space<vmem>>, vector<1x1xf32>
      tpu.vector_store %arg10[%c0_13, %c0_14], %18 {strides = array<i32>} : memref<1x1xf32, #tpu.memory_space<vmem>>, vector<1x1xf32>,
    } else {
    }
    %c0_i32_2 = arith.constant 0 : i32
    %6 = arith.cmpi eq, %arg0, %c0_i32_2 : i32
    %7 = arith.extui %6 : i1 to i32
    %c0_i32_3 = arith.constant 0 : i32
    %8 = arith.cmpi ne, %7, %c0_i32_3 : i32
    scf.if %8 {
      %c0_i32_5 = arith.constant 0 : i32
      %12 = arith.subi %c0_i32_5, %arg1 : i32
      %c0 = arith.constant 0 : index
      %c0_6 = arith.constant 0 : index
      %13 = vector.load %arg2[%c0, %c0_6] : memref<8x128xf32, #tpu.memory_space<vmem>>, vector<8x128xf32>
      %14 = vector.extract_strided_slice %13 {offsets = [0, 0], sizes = [1, 128], strides = [1, 1]} : vector<8x128xf32> to vector<1x128xf32>
      %c0_7 = arith.constant 0 : index
      %c0_8 = arith.constant 0 : index
      %15 = vector.load %arg3[%c0_7, %c0_8] : memref<128x128xf32, #tpu.memory_space<vmem>>, vector<128x128xf32>
      %cst = arith.constant dense<0.000000e+00> : vector<1x128xf32>
      %16 = tpu.matmul %14, %15, %cst {dimension_numbers = #tpu.dot_dimension_numbers<[1], [0], [0], [1], [0, 0, 1, 1], [], []>} : vector<1x128xf32>, vector<128x128xf32>, vector<1x128xf32> -> vector<1x128xf32>
      %c127 = arith.constant 127 : index
      %c0_9 = arith.constant 0 : index
      %17 = vector.load %arg3[%c127, %c0_9] : memref<128x128xf32, #tpu.memory_space<vmem>>, vector<1x128xf32>
      %cst_10 = arith.constant 9.900000e-01 : f32
      %18 = vector.broadcast %cst_10 : f32 to vector<1x128xf32>
      %19 = arith.mulf %18, %17 : vector<1x128xf32>
      %c0_11 = arith.constant 0 : index
      %c0_12 = arith.constant 0 : index
      %20 = vector.load %arg7[%c0_11, %c0_12] : memref<1x1xf32, #tpu.memory_space<vmem>>, vector<1x1xf32>
      %21 = vector.broadcast %20 : vector<1x1xf32> to vector<1x128xf32>
      %22 = arith.mulf %19, %21 : vector<1x128xf32>
      %23 = arith.addf %16, %22 : vector<1x128xf32>
      %24 = arith.index_cast %12 : i32 to index
      %c0_13 = arith.constant 0 : index
      %c0_14 = arith.constant 0 : index
      %25 = vector.load %arg5[%24, %c0_13, %c0_14] : memref<1x8x128xf32, #tpu.memory_space<vmem>>, vector<1x8x128xf32>
      %26 = vector.shape_cast %25 : vector<1x8x128xf32> to vector<8x128xf32>
      %27 = vector.shape_cast %13 : vector<8x128xf32> to vector<1x8x128xf32>
      tpu.vector_store %arg5[%24, %c0_13, %c0_14], %27 {strides = array<i32>} : memref<1x8x128xf32, #tpu.memory_space<vmem>>, vector<1x8x128xf32>,
      %28 = arith.index_cast %12 : i32 to index
      %c0_15 = arith.constant 0 : index
      %c0_16 = arith.constant 0 : index
      %29 = vector.load %arg6[%28, %c0_15, %c0_16] : memref<1x1x128xf32, #tpu.memory_space<vmem>>, vector<1x1x128xf32>
      %30 = vector.shape_cast %29 : vector<1x1x128xf32> to vector<1x128xf32>
      %31 = vector.shape_cast %23 : vector<1x128xf32> to vector<1x1x128xf32>
      tpu.vector_store %arg6[%28, %c0_15, %c0_16], %31 {strides = array<i32>} : memref<1x1x128xf32, #tpu.memory_space<vmem>>, vector<1x1x128xf32>,
      %32 = vector.extract_strided_slice %23 {offsets = [0, 0], sizes = [1, 1], strides = [1, 1]} : vector<1x128xf32> to vector<1x1xf32>
      %c0_17 = arith.constant 0 : index
      %c0_18 = arith.constant 0 : index
      %33 = vector.load %arg7[%c0_17, %c0_18] : memref<1x1xf32, #tpu.memory_space<vmem>>, vector<1x1xf32>
      tpu.vector_store %arg7[%c0_17, %c0_18], %32 {strides = array<i32>} : memref<1x1xf32, #tpu.memory_space<vmem>>, vector<1x1xf32>,
      %c128_i32 = arith.constant 128 : i32
      %34 = arith.muli %12, %c128_i32 : i32
      %35 = vector.broadcast %34 : i32 to vector<1x128xi32>
      %36 = arith.addi %35, %0 : vector<1x128xi32>
      %c8_i32 = arith.constant 8 : i32
      %37 = vector.broadcast %c8_i32 : i32 to vector<1x128xi32>
      %38 = arith.cmpi slt, %36, %37 : vector<1x128xi32>
      %cst_19 = arith.constant 0.000000e+00 : f32
      %39 = vector.broadcast %cst_19 : f32 to vector<1x128xf32>
      %40 = arith.select %38, %23, %39 : vector<1x128xi1>, vector<1x128xf32>
      %c0_20 = arith.constant 0 : index
      %c0_21 = arith.constant 0 : index
      %41 = vector.load %arg8[%c0_20, %c0_21] : memref<1x1xf32, #tpu.memory_space<vmem>>, vector<1x1xf32>
      %42 = vector.shape_cast %40 : vector<1x128xf32> to vector<1x1x128xf32>
      %cst_22 = arith.constant dense<0.000000e+00> : vector<1xf32>
      %43 = vector.multi_reduction <add>, %42, %cst_22 [1, 2] : vector<1x1x128xf32> to vector<1xf32>
      %44 = vector.shape_cast %43 : vector<1xf32> to vector<1x1x1xf32>
      %45 = vector.extract %44[0, 0, 0] : f32 from vector<1x1x1xf32>
      %46 = vector.broadcast %45 : f32 to vector<1x1xf32>
      %47 = arith.addf %41, %46 : vector<1x1xf32>
      %c0_23 = arith.constant 0 : index
      %c0_24 = arith.constant 0 : index
      %48 = vector.load %arg8[%c0_23, %c0_24] : memref<1x1xf32, #tpu.memory_space<vmem>>, vector<1x1xf32>
      tpu.vector_store %arg8[%c0_23, %c0_24], %47 {strides = array<i32>} : memref<1x1xf32, #tpu.memory_space<vmem>>, vector<1x1xf32>,
      %c0_25 = arith.constant 0 : index
      %c0_26 = arith.constant 0 : index
      %49 = vector.load %arg9[%c0_25, %c0_26] : memref<1x1xf32, #tpu.memory_space<vmem>>, vector<1x1xf32>
      %50 = arith.mulf %40, %40 : vector<1x128xf32>
      %51 = vector.shape_cast %50 : vector<1x128xf32> to vector<1x1x128xf32>
      %cst_27 = arith.constant dense<0.000000e+00> : vector<1xf32>
      %52 = vector.multi_reduction <add>, %51, %cst_27 [1, 2] : vector<1x1x128xf32> to vector<1xf32>
      %53 = vector.shape_cast %52 : vector<1xf32> to vector<1x1x1xf32>
      %54 = vector.extract %53[0, 0, 0] : f32 from vector<1x1x1xf32>
      %55 = vector.broadcast %54 : f32 to vector<1x1xf32>
      %56 = arith.addf %49, %55 : vector<1x1xf32>
      %c0_28 = arith.constant 0 : index
      %c0_29 = arith.constant 0 : index
      %57 = vector.load %arg9[%c0_28, %c0_29] : memref<1x1xf32, #tpu.memory_space<vmem>>, vector<1x1xf32>
      tpu.vector_store %arg9[%c0_28, %c0_29], %56 {strides = array<i32>} : memref<1x1xf32, #tpu.memory_space<vmem>>, vector<1x1xf32>,
    } else {
    }
    %c1_i32 = arith.constant 1 : i32
    %9 = arith.cmpi eq, %arg0, %c1_i32 : i32
    %10 = arith.extui %9 : i1 to i32
    %c0_i32_4 = arith.constant 0 : i32
    %11 = arith.cmpi ne, %10, %c0_i32_4 : i32
    scf.if %11 {
      %c0_i32_5 = arith.constant 0 : i32
      %12 = arith.cmpi eq, %arg1, %c0_i32_5 : i32
      %13 = arith.extui %12 : i1 to i32
      %c0_i32_6 = arith.constant 0 : i32
      %14 = arith.cmpi ne, %13, %c0_i32_6 : i32
      scf.if %14 {
        %c0_24 = arith.constant 0 : index
        %c0_25 = arith.constant 0 : index
        %62 = vector.load %arg8[%c0_24, %c0_25] : memref<1x1xf32, #tpu.memory_space<vmem>>, vector<1x1xf32>
        %c0_26 = arith.constant 0 : index
        %c0_27 = arith.constant 0 : index
        %63 = vector.load %arg9[%c0_26, %c0_27] : memref<1x1xf32, #tpu.memory_space<vmem>>, vector<1x1xf32>
        %cst_28 = arith.constant 1.250000e-01 : f32
        %64 = vector.broadcast %cst_28 : f32 to vector<1x1xf32>
        %65 = arith.mulf %62, %64 : vector<1x1xf32>
        %cst_29 = arith.constant 8.000000e+00 : f32
        %66 = vector.broadcast %cst_29 : f32 to vector<1x1xf32>
        %67 = arith.mulf %66, %65 : vector<1x1xf32>
        %68 = arith.mulf %67, %65 : vector<1x1xf32>
        %69 = arith.subf %63, %68 : vector<1x1xf32>
        %cst_30 = arith.constant 0.142857149 : f32
        %70 = vector.broadcast %cst_30 : f32 to vector<1x1xf32>
        %71 = arith.mulf %69, %70 : vector<1x1xf32>
        %c0_31 = arith.constant 0 : index
        %c0_32 = arith.constant 0 : index
        %72 = vector.load %arg8[%c0_31, %c0_32] : memref<1x1xf32, #tpu.memory_space<vmem>>, vector<1x1xf32>
        tpu.vector_store %arg8[%c0_31, %c0_32], %65 {strides = array<i32>} : memref<1x1xf32, #tpu.memory_space<vmem>>, vector<1x1xf32>,
        %cst_33 = arith.constant 0.000000e+00 : f32
        %73 = vector.broadcast %cst_33 : f32 to vector<1x1xf32>
        %74 = arith.maximumf %71, %73 : vector<1x1xf32>
        %75 = math.rsqrt %74 : vector<1x1xf32>
        %c0_34 = arith.constant 0 : index
        %c0_35 = arith.constant 0 : index
        %76 = vector.load %arg9[%c0_34, %c0_35] : memref<1x1xf32, #tpu.memory_space<vmem>>, vector<1x1xf32>
        tpu.vector_store %arg9[%c0_34, %c0_35], %75 {strides = array<i32>} : memref<1x1xf32, #tpu.memory_space<vmem>>, vector<1x1xf32>,
      } else {
      }
      %c0 = arith.constant 0 : index
      %c0_7 = arith.constant 0 : index
      %15 = vector.load %arg8[%c0, %c0_7] : memref<1x1xf32, #tpu.memory_space<vmem>>, vector<1x1xf32>
      %c0_8 = arith.constant 0 : index
      %c0_9 = arith.constant 0 : index
      %16 = vector.load %arg9[%c0_8, %c0_9] : memref<1x1xf32, #tpu.memory_space<vmem>>, vector<1x1xf32>
      %17 = arith.index_cast %arg1 : i32 to index
      %c0_10 = arith.constant 0 : index
      %c0_11 = arith.constant 0 : index
      %18 = vector.load %arg6[%17, %c0_10, %c0_11] : memref<1x1x128xf32, #tpu.memory_space<vmem>>, vector<1x1x128xf32>
      %19 = vector.shape_cast %18 : vector<1x1x128xf32> to vector<1x128xf32>
      %20 = vector.broadcast %15 : vector<1x1xf32> to vector<1x128xf32>
      %21 = arith.subf %19, %20 : vector<1x128xf32>
      %22 = vector.broadcast %16 : vector<1x1xf32> to vector<1x128xf32>
      %23 = arith.mulf %21, %22 : vector<1x128xf32>
      %24 = arith.index_cast %arg1 : i32 to index
      %c0_12 = arith.constant 0 : index
      %c0_13 = arith.constant 0 : index
      %25 = vector.load %arg5[%24, %c0_12, %c0_13] : memref<1x8x128xf32, #tpu.memory_space<vmem>>, vector<1x8x128xf32>
      %26 = vector.shape_cast %25 : vector<1x8x128xf32> to vector<8x128xf32>
      %27 = vector.extract_strided_slice %26 {offsets = [1, 0], sizes = [1, 128], strides = [1, 1]} : vector<8x128xf32> to vector<1x128xf32>
      %28 = vector.extract_strided_slice %26 {offsets = [2, 0], sizes = [1, 128], strides = [1, 1]} : vector<8x128xf32> to vector<1x128xf32>
      %29 = vector.extract_strided_slice %26 {offsets = [3, 0], sizes = [1, 128], strides = [1, 1]} : vector<8x128xf32> to vector<1x128xf32>
      %30 = vector.extract_strided_slice %26 {offsets = [4, 0], sizes = [1, 128], strides = [1, 1]} : vector<8x128xf32> to vector<1x128xf32>
      %31 = arith.subf %23, %27 : vector<1x128xf32>
      %32 = arith.subf %28, %29 : vector<1x128xf32>
      %33 = math.exp %32 : vector<1x128xf32>
      %34 = arith.mulf %33, %31 : vector<1x128xf32>
      %cst = arith.constant 8.000000e-01 : f32
      %cst_14 = arith.constant 1.200000e+00 : f32
      %35 = vector.broadcast %cst : f32 to vector<1x128xf32>
      %36 = arith.maximumf %35, %33 : vector<1x128xf32>
      %37 = vector.broadcast %cst_14 : f32 to vector<1x128xf32>
      %38 = arith.minimumf %37, %36 : vector<1x128xf32>
      %39 = arith.mulf %38, %31 : vector<1x128xf32>
      %40 = arith.minimumf %34, %39 : vector<1x128xf32>
      %cst_15 = arith.constant 5.000000e-01 : f32
      %41 = vector.broadcast %cst_15 : f32 to vector<1x128xf32>
      %42 = arith.mulf %41, %30 : vector<1x128xf32>
      %43 = arith.addf %40, %42 : vector<1x128xf32>
      %c128_i32 = arith.constant 128 : i32
      %44 = arith.muli %arg1, %c128_i32 : i32
      %45 = vector.broadcast %44 : i32 to vector<1x128xi32>
      %46 = arith.addi %45, %0 : vector<1x128xi32>
      %c8_i32 = arith.constant 8 : i32
      %47 = vector.broadcast %c8_i32 : i32 to vector<1x128xi32>
      %48 = arith.cmpi slt, %46, %47 : vector<1x128xi32>
      %c0_16 = arith.constant 0 : index
      %c0_17 = arith.constant 0 : index
      %49 = vector.load %arg10[%c0_16, %c0_17] : memref<1x1xf32, #tpu.memory_space<vmem>>, vector<1x1xf32>
      %cst_18 = arith.constant 0.000000e+00 : f32
      %50 = vector.broadcast %cst_18 : f32 to vector<1x128xf32>
      %51 = arith.select %48, %43, %50 : vector<1x128xi1>, vector<1x128xf32>
      %52 = vector.shape_cast %51 : vector<1x128xf32> to vector<1x1x128xf32>
      %cst_19 = arith.constant dense<0.000000e+00> : vector<1xf32>
      %53 = vector.multi_reduction <add>, %52, %cst_19 [1, 2] : vector<1x1x128xf32> to vector<1xf32>
      %54 = vector.shape_cast %53 : vector<1xf32> to vector<1x1x1xf32>
      %55 = vector.extract %54[0, 0, 0] : f32 from vector<1x1x1xf32>
      %56 = vector.broadcast %55 : f32 to vector<1x1xf32>
      %57 = arith.addf %49, %56 : vector<1x1xf32>
      %c0_20 = arith.constant 0 : index
      %c0_21 = arith.constant 0 : index
      %58 = vector.load %arg10[%c0_20, %c0_21] : memref<1x1xf32, #tpu.memory_space<vmem>>, vector<1x1xf32>
      tpu.vector_store %arg10[%c0_20, %c0_21], %57 {strides = array<i32>} : memref<1x1xf32, #tpu.memory_space<vmem>>, vector<1x1xf32>,
      %c0_i32_22 = arith.constant 0 : i32
      %59 = arith.cmpi eq, %arg1, %c0_i32_22 : i32
      %60 = arith.extui %59 : i1 to i32
      %c0_i32_23 = arith.constant 0 : i32
      %61 = arith.cmpi ne, %60, %c0_i32_23 : i32
      scf.if %61 {
        %cst_24 = arith.constant 0.000000e+00 : f32
        %62 = vector.broadcast %cst_24 : f32 to vector<1x1xf32>
        %63 = arith.subf %62, %57 : vector<1x1xf32>
        %cst_25 = arith.constant 1.250000e-01 : f32
        %64 = vector.broadcast %cst_25 : f32 to vector<1x1xf32>
        %65 = arith.mulf %63, %64 : vector<1x1xf32>
        %c0_26 = arith.constant 0 : index
        %c0_27 = arith.constant 0 : index
        %66 = vector.load %arg4[%c0_26, %c0_27] : memref<1x1xf32, #tpu.memory_space<vmem>>, vector<1x1xf32>
        tpu.vector_store %arg4[%c0_26, %c0_27], %65 {strides = array<i32>} : memref<1x1xf32, #tpu.memory_space<vmem>>, vector<1x1xf32>,
      } else {
      }
    } else {
    }
    return
  }
  func.func @transform_0(%arg0: i32, %arg1: i32) -> (i32, i32) {
    %c0_i32 = arith.constant 0 : i32
    %0 = arith.cmpi eq, %arg0, %c0_i32 : i32
    %c0_i32_0 = arith.constant 0 : i32
    %1 = arith.subi %c0_i32_0, %arg1 : i32
    %c0_i32_1 = arith.constant 0 : i32
    %2 = arith.select %0, %1, %c0_i32_1 : i32
    %c0_i32_2 = arith.constant 0 : i32
    %c0_i32_3 = arith.constant 0 : i32
    return %c0_i32_2, %2 : i32, i32
  }
  func.func @transform_1(%arg0: i32, %arg1: i32) -> (i32, i32) {
    %c0_i32 = arith.constant 0 : i32
    %c0_i32_0 = arith.constant 0 : i32
    %c0_i32_1 = arith.constant 0 : i32
    return %c0_i32, %c0_i32_0 : i32, i32
  }
  func.func @transform_2(%arg0: i32, %arg1: i32) -> (i32, i32) {
    %c0_i32 = arith.constant 0 : i32
    %c0_i32_0 = arith.constant 0 : i32
    %c0_i32_1 = arith.constant 0 : i32
    return %c0_i32, %c0_i32_0 : i32, i32
  }
}

</mosaic_0001>

<bundles_post_ra>
// kernel: tpu_custom_call.1
= control target key start
LH: loop header
LB: loop body
LE: loop exit
PB: predicated region body
PF: predicated region fallthrough
CT: control target
= control target key end

     0   :  { %7 = vsyncpa [#allocation9], 0  ;;  %s798_s0 = inlined_call_operand.hbm [shape: f32[8,128], index: 0, kind: input, shape index: {}]   ;;  %s799_s1 = inlined_call_operand.hbm [shape: f32[128,128], index: 1, kind: input, shape index: {}]   ;;  %s800_s2 = inlined_call_operand.hbm [shape: f32[1,1], index: 2, kind: output, shape index: {}]  }
   0x1   :  { %9 = vsyncpa [#allocation9 + $0x1], 0 }
   0x2   :  { %10 = vsyncpa [#allocation12], 0 }
   0x3   :  { %11 = vsyncpa [#allocation10], 0  ;;  %s717_s9 = smov 0   ;;  %s719_s10 = smov 0  }
   0x4   :  { %s721_s11 = smov 0  }
   0x5 LB: > { %s483_s12 = sadd.s32 4294967295, %s692_s11   ;;  %s29_s13 = sadd.s32 1, %s688_s10  ;;  %s692_s11 = sphi %s721_s11, %s17_s11   ;;  %s688_s10 = sphi %s719_s10, %s804_s10   ;;  %s684_s9 = sphi %s717_s9, %s803_s9  }
   0x6   : > { %p31_p0 = scmp.ge.s32.totalorder %s29_s13, 2  ;;  %p484_p1 = scmp.ge.s32.totalorder %s692_s11, 1 }
   0x7   : > { %p108_p2 = scmp.lt.s32.totalorder %s692_s11, 3  ;;  %p744_p4 = scmp.eq.s32.totalorder %s483_s12, 0 }
   0x8   : > { %s806_s13 = smov (%p31_p0, %s29_s13), 0  ;;  %s119_s18 = sshll.u32 %s799_s1, 4  ;;  %s120_s18 = int_to_ptr.hbm [resolvable:$true] %s119_s18 }
   0x9   : > { %p738_p3 = pnand %p484_p1, %p108_p2  ;;  %s694_s19 = smov [#allocation11]  }
   0xa   : > { %s121_s20 = sshll.u32 %s694_s19, 4  ;;  %s695_s21 = smov 128   ;;  %s122_s20 = int_to_ptr.vmem [resolvable:$true] %s121_s20 }
   0xb   : > { %p517_p5 = pneg %p738_p3  ;;  %s696_s22 = smov 8  }
   0xc   : > { %p526_p7 = scmp.lt.s32.totalorder %s692_s11, 2  ;;  %p527_p8 = scmp.eq.s32.totalorder %s692_s11, 0 }
   0xd   : > { %p518_p6 = pnand %p744_p4, %p517_p5  ;;  %s148_s25 = sshll.u32 %s798_s0, 4  ;;  %s149_s25 = int_to_ptr.hbm [resolvable:$true] %s148_s25 }
   0xe   : > { %s697_s26 = smov [#allocation8]   ;;  %p522_p9 = pnand %p527_p8, %p526_p7 }
   0xf   : > { %520 = dma.hbm_to_vmem [thread:$0]  (!%p518_p6), %s120_s18, 2048, %s122_s20, [#allocation12], %s695_s21, %s695_s21, %s696_s22  }
  0x10   : > { %s150_s27 = sshll.u32 %s697_s26, 4  ;;  %159 = sbr.rel (%p738_p3) target bundleno = 755 (0x2f3), region = 28  ;;  %s151_s27 = int_to_ptr.vmem [resolvable:$true] %s150_s27 }
  0x11   : > { %524 = dma.hbm_to_vmem [thread:$0]  (!%p522_p9), %s149_s25, 128, %s151_s27, [#allocation9]  }
  0x15   : > { %671 = dma.done.wait (%p744_p4), [#allocation9], 128  }
  0x16   : > { %673 = vsyncadd (%p744_p4), [#allocation9], 4294967168 }
  0x17   : > { %675 = dma.done.wait (%p744_p4), [#allocation12], 2048  }
  0x18   : > { %677 = vsyncadd (%p744_p4), [#allocation12], 4294965248  ;;  %v190_v0 = vlaneseq  ;;  %p192_p10 = scmp.eq.s32.totalorder %s684_s9, 0 }
  0x19   : > { %vm198_vm0 = vcmask (%p192_p10), 0   ;;  %v698_v2 = vmov (%p192_p10), 0.0  }
  0x1a   : > { %v771_v1 = vand.u32 127, %v190_v0  ;;  %197 = sbr.rel (!%p192_p10) target bundleno = 31 (0x1f), region = 40  ;;  %199 = vst.msk [vmem:[#allocation4] sm:$0x1] (%p192_p10), %vm198_vm0, %v698_v2 }
  0x1b   : > { %200 = vst.msk [vmem:[#allocation5] sm:$0x1] (%p192_p10), %vm198_vm0, %v698_v2 }
  0x1c   : > { %201 = vst.msk [vmem:[#allocation6] sm:$0x1] (%p192_p10), %vm198_vm0, %v698_v2 }
  0x1d   : > { %202 = vst.msk [vmem:[#allocation7] sm:$0x1] (%p192_p10), %vm198_vm0, %v698_v2 }
  0x1f PF: > { %p492_p11 = scmp.ne.s32.totalorder %s684_s9, 0 }
  0x21   : > { %205 = sbr.rel (%p492_p11) target bundleno = 384 (0x180), region = 44 }
  0x26   : > { %v223_v3 = vld [vmem:[#allocation11 + $0x78] sm:$0xff]  ;;  %v222_v4 = vld [vmem:[#allocation11 + $0x70] sm:$0xff]  ;;  %v699_v5 = vmov 0   ;;  %v221_v6 = vld [vmem:[#allocation11 + $0x68] sm:$0xff]  ;;  %vm264_vm1 = vcmp.lt.s32.totalorder %v771_v1, 8  ;;  %vm259_vm2 = vcmask 0  }
  0x27   : > { %234 = vmatpush.msra.mxu0 %v223_v3  ;;  %564 = vset.pattern.permute.xlu0 %v699_v5  ;;  %v220_v7 = vld [vmem:[#allocation11 + $0x60] sm:$0xff]  ;;  %v207_v8 = vld [vmem:[#allocation8] sm:$0xff]  ;;  %v226_v9 = vld [vmem:[#allocation4] sm:$0x1]  ;;  %vm267_vm3 = vcmask 1040384  }
  0x28   : > { %v219_v10 = vld [vmem:[#allocation11 + $0x58] sm:$0xff]  ;;  %256 = vst [vmem:[#allocation2] sm:$0xff] %v207_v8  ;;  %229 = vperm.xlu0 %564, %v226_v9   ;;  %v218_v11 = vld [vmem:[#allocation11 + $0x50] sm:$0xff]  ;;  %v217_v12 = vld [vmem:[#allocation11 + $0x48] sm:$0xff] }
  0x29   : > { %235 = vmatpush.msra.mxu0 %v222_v4  ;;  %v216_v13 = vld [vmem:[#allocation11 + $0x40] sm:$0xff]  ;;  %v215_v14 = vld [vmem:[#allocation11 + $0x38] sm:$0xff]  ;;  %v214_v15 = vld [vmem:[#allocation11 + $0x30] sm:$0xff] }
  0x2a   : > { %v213_v16 = vld [vmem:[#allocation11 + $0x28] sm:$0xff]  ;;  %v212_v17 = vld [vmem:[#allocation11 + $0x20] sm:$0xff]  ;;  %v211_v18 = vld [vmem:[#allocation11 + $0x18] sm:$0xff] }
  0x2b   : > { %236 = vmatpush.msra.mxu0 %v221_v6  ;;  %v210_v19 = vld [vmem:[#allocation11 + $0x10] sm:$0xff]  ;;  %v209_v20 = vld [vmem:[#allocation11 + $0x8] sm:$0xff]  ;;  %v208_v21 = vld [vmem:[#allocation11] sm:$0xff] }
  0x2c   : > { %v224_v23 = vld [vmem:[#allocation11 + $0x7f] sm:$0x1]  ;;  %v266_v47 = vld [vmem:[#allocation5] sm:$0x1]  ;;  %v281_v49 = vld [vmem:[#allocation6] sm:$0x1] }
  0x2d   : > { %237 = vmatpush.msra.mxu0 %v220_v7  ;;  %v225_v25 = vmul.f32 0.99, %v224_v23 }
  0x2f   : > { %238 = vmatpush.msra.mxu0 %v219_v10 }
  0x31   : > { %239 = vmatpush.msra.mxu0 %v218_v11 }
  0x33   : > { %240 = vmatpush.msra.mxu0 %v217_v12 }
  0x35   : > { %241 = vmatpush.msra.mxu0 %v216_v13 }
  0x37   : > { %242 = vmatpush.msra.mxu0 %v215_v14 }
  0x39   : > { %243 = vmatpush.msra.mxu0 %v214_v15 }
  0x3b   : > { %244 = vmatpush.msra.mxu0 %v213_v16 }
  0x3d   : > { %245 = vmatpush.msra.mxu0 %v212_v17 }
  0x3f   : > { %246 = vmatpush.msra.mxu0 %v211_v18 }
  0x41   : > { %247 = vmatpush.msra.mxu0 %v210_v19 }
  0x43   : > { %248 = vmatpush.msra.mxu0 %v209_v20 }
  0x45   : > { %249 = vmatpush.msra.mxu0 %v208_v21 }
  0x46   : > { %250 = vmatmul.f32.vlgmr.msra.gmra.mxu0 %v207_v8 }
  0x9a   : > { %v230_v22 = vpop.permute.xlu0 %229 }
  0x9b   : > { %v232_v24 = vperm.slane %v230_v22, 0 }
  0x9d   : > { %v233_v26 = vmul.f32 %v232_v24, %v225_v25 }
  0xc3   : > { %v251_v27 = vpop.f32.mrf.mxu0 }
  0xc4   : > { %v252_v28 = vadd.f32 %v251_v27, %v233_v26 }
  0xc6   : > { %258 = vst [vmem:[#allocation3] sm:$0x1] %v252_v28  ;;  %v265_v29 = vsel %vm264_vm1, %v252_v28, 0.0 }
  0xc7   : > { %260 = vst.msk [vmem:[#allocation4] sm:$0x1] %vm259_vm2, %v252_v28  ;;  %v268_v30 = vsel %vm267_vm3, %v265_v29, 0.0  ;;  %v282_v31 = vmul.f32 %v265_v29, %v265_v29 }
  0xc8   : > { %269 = vadd.xlane.f32.xlu0 %v268_v30 }
  0xc9   : > { %v283_v32 = vsel %vm267_vm3, %v282_v31, 0.0 }
  0xca   : > { %284 = vadd.xlane.f32.xlu1 %v283_v32 }
 0x13b   : > { %v270_v33 = vpop.xlane.xlu0 %269 }
 0x13c   : > { %v271_v34 = vrot.slane %v270_v33, 4 }
 0x13d   : > { %v285_v35 = vpop.xlane.xlu1 %284 }
 0x13e   : > { %v272_v36 = vadd.f32 %v271_v34, %v270_v33  ;;  %v286_v37 = vrot.slane %v285_v35, 4 }
 0x140   : > { %v273_v38 = vrot.slane %v272_v36, 2  ;;  %v287_v39 = vadd.f32 %v286_v37, %v285_v35 }
 0x142   : > { %v288_v40 = vrot.slane %v287_v39, 2  ;;  %v274_v41 = vadd.f32 %v273_v38, %v272_v36 }
 0x144   : > { %v289_v42 = vadd.f32 %v288_v40, %v287_v39  ;;  %v275_v43 = vrot.slane %v274_v41, 1 }
 0x146   : > { %v276_v44 = vadd.f32 %v275_v43, %v274_v41  ;;  %v290_v45 = vrot.slane %v289_v42, 1 }
 0x148   : > { %499 = vpush %v276_v44  ;;  %v291_v46 = vadd.f32 %v290_v45, %v289_v42 }
 0x14a   : > { %501 = vpush %v291_v46 }
 0x179   : > { %s500_s28 = spop %499 }
 0x17a   : > { %v278_v48 = vstv %s500_s28 }
 0x17b   : > { %v279_v50 = vadd.f32 %v278_v48, %v266_v47  ;;  %s502_s29 = spop %501 }
 0x17c   : > { %v293_v51 = vstv %s502_s29 }
 0x17d   : > { %280 = vst.msk [vmem:[#allocation5] sm:$0x1] %vm259_vm2, %v279_v50  ;;  %v294_v52 = vadd.f32 %v293_v51, %v281_v49 }
 0x17f   : > { %295 = vst.msk [vmem:[#allocation6] sm:$0x1] %vm259_vm2, %v294_v52 }
 0x180 PF: > { %p493_p12 = scmp.ne.s32.totalorder %s684_s9, 1 }
 0x182   : > { %299 = sbr.rel (%p493_p12) target bundleno = 749 (0x2ed), region = 48 }
 0x187   : > { %v303_v53 = vld [vmem:[#allocation5] sm:$0x1]  ;;  %vm310_vm4 = vcmask 0   ;;  %v700_v54 = vmov 0   ;;  %v304_v57 = vld [vmem:[#allocation6] sm:$0x1] }
 0x188   : > { %565 = vset.pattern.permute.xlu0 %v700_v54  ;;  %v305_v55 = vmul.f32 0.125, %v303_v53  ;;  %v344_v8 = vld [vmem:[#allocation2] sm:$0xff]  ;;  %v327_v15 = vld [vmem:[#allocation3] sm:$0x1]  ;;  %vm372_vm8 = vcmp.lt.s32.totalorder %v771_v1, 8  ;;  %vm378_vm9 = vcmask 1040384  }
 0x189   : > { %346 = vst [vmem:[#allocation1] sm:$0xff] %v344_v8  ;;  %v351_v9 = vrot.slane %v344_v8, 1  ;;  %v364_v24 = vmul.f32 0.5, %v344_v8  ;;  %v373_v41 = vld [vmem:[#allocation7] sm:$0x1] }
 0x18a   : > { %311 = vst.msk [vmem:[#allocation5] sm:$0x1] %vm310_vm4, %v305_v55  ;;  %v306_v56 = vmul.f32 8.0, %v305_v55 }
 0x18b   : > { %v353_v10 = vsub.f32 %v344_v8, %v351_v9  ;;  %v366_v28 = vrot.slane %v364_v24, 2 }
 0x18c   : > { %v307_v58 = vmul.f32 %v306_v56, %v305_v55 }
 0x18d   : > { %v354_v11 = vmul.f32 1.442695, %v353_v10 }
 0x18e   : > { %v308_v59 = vsub.f32 %v304_v57, %v307_v58 }
 0x190   : > { %v309_v60 = vmul.f32 0.14285715, %v308_v59  ;;  %v348_v20 = vld [vmem:[#allocation1 + $0x1] ss:$9 sm:$0xff] }
 0x191   : > { %v324_v61 = vld [vmem:[#allocation5] sm:$0x1] }
 0x192   : > { %330 = vperm.xlu0 %565, %v324_v61   ;;  %v312_v62 = vmax.f32 %v309_v60, 0.0 }
 0x194   : > { %566 = vrsqrt.f32 %v312_v62  ;;  %vm319_vm5 = vweird.f32 %v312_v62 }
 0x195   : > { %568 = vpow2.f32 %v354_v11 }
 0x19a   : > { %v567_v63 = vpop.eup %566 }
 0x19b   : > { %v314_v0 = vmul.f32 %v567_v63, %v312_v62  ;;  %vm320_vm6 = vweird.f32 %v567_v63  ;;  %v569_v14 = vpop.eup %568 }
 0x19c   : > { %vm321_vm7 = vmor %vm319_vm5, %vm320_vm6  ;;  %v360_v18 = vmax.f32 %v569_v14, 0.8 }
 0x19d   : > { %v315_v2 = vmul.f32 %v567_v63, %v314_v0 }
 0x19e   : > { %v361_v22 = vmin.f32 %v360_v18, 1.2 }
 0x19f   : > { %v316_v3 = vmul.f32 0.5, %v315_v2 }
 0x1a1   : > { %v317_v4 = vsub.f32 1.5, %v316_v3 }
 0x1a3   : > { %v318_v5 = vmul.f32 %v567_v63, %v317_v4 }
 0x1a5   : > { %v322_v6 = vsel %vm321_vm7, %v567_v63, %v318_v5 }
 0x1a6   : > { %323 = vst.msk [vmem:[#allocation6] sm:$0x1] %vm310_vm4, %v322_v6 }
 0x1ad   : > { %v325_v7 = vld [vmem:[#allocation6] sm:$0x1] }
 0x1ae   : > { %337 = vperm.xlu0 %565, %v325_v7  }
 0x204   : > { %v331_v12 = vpop.permute.xlu0 %330 }
 0x205   : > { %v333_v13 = vperm.slane %v331_v12, 0 }
 0x207   : > { %v334_v17 = vsub.f32 %v327_v15, %v333_v13 }
 0x220   : > { %v338_v16 = vpop.permute.xlu0 %337 }
 0x221   : > { %v340_v19 = vperm.slane %v338_v16, 0 }
 0x223   : > { %v341_v21 = vmul.f32 %v340_v19, %v334_v17 }
 0x225   : > { %v350_v23 = vsub.f32 %v341_v21, %v348_v20 }
 0x227   : > { %v357_v25 = vperm.slane %v350_v23, 0 }
 0x229   : > { %v359_v26 = vmul.f32 %v569_v14, %v357_v25  ;;  %v362_v27 = vmul.f32 %v361_v22, %v357_v25 }
 0x22b   : > { %v363_v29 = vmin.f32 %v359_v26, %v362_v27 }
 0x22d   : > { %v368_v30 = vadd.f32 %v366_v28, %v363_v29 }
 0x22f   : > { %v374_v31 = vsel %vm372_vm8, %v368_v30, 0.0 }
 0x230   : > { %v376_v32 = vrot.slane %v374_v31, 2 }
 0x232   : > { %v379_v33 = vsel %vm378_vm9, %v376_v32, 0.0 }
 0x233   : > { %380 = vadd.xlane.f32.xlu1 %v379_v33 }
 0x2a6   : > { %v381_v34 = vpop.xlane.xlu1 %380 }
 0x2a7   : > { %v382_v35 = vrot.slane %v381_v34, 4 }
 0x2a9   : > { %v383_v36 = vadd.f32 %v382_v35, %v381_v34 }
 0x2ab   : > { %v384_v37 = vrot.slane %v383_v36, 2 }
 0x2ad   : > { %v385_v38 = vadd.f32 %v384_v37, %v383_v36 }
 0x2af   : > { %v386_v39 = vrot.slane %v385_v38, 1 }
 0x2b1   : > { %v387_v40 = vadd.f32 %v386_v39, %v385_v38 }
 0x2b3   : > { %503 = vpush %v387_v40 }
 0x2e4   : > { %s504_s30 = spop %503 }
 0x2e5   : > { %v389_v42 = vstv %s504_s30 }
 0x2e6   : > { %v390_v43 = vadd.f32 %v389_v42, %v373_v41 }
 0x2e8   : > { %392 = vst.msk [vmem:[#allocation7] sm:$0x1] %vm310_vm4, %v390_v43  ;;  %v396_v1 = vsub.f32 0.0, %v390_v43 }
 0x2ea   : > { %v397_v44 = vmul.f32 0.125, %v396_v1 }
 0x2ec   : > { %398 = vst.msk [vmem:[#allocation13] sm:$0x1] %vm310_vm4, %v397_v44 }
 0x2ed PF: > { %p530_p13 = scmp.eq.s32.totalorder %s483_s12, 1  ;;  %s407_s5 = sshll.u32 %s800_s2, 4  ;;  %s408_s5 = int_to_ptr.hbm [resolvable:$true] %s407_s5 }
 0x2ee   : > { %s701_s6 = smov [#allocation13]  }
 0x2ef   : > { %s405_s7 = sshll.u32 %s701_s6, 4  ;;  %s406_s7 = int_to_ptr.vmem [resolvable:$true] %s405_s7 }
 0x2f0   : > { %514 = dma.vmem_to_hbm [thread:$0]  (%p530_p13), %s406_s7, 16, %s408_s5, [#allocation10]  }
 0x2f1   : > { %679 = dma.done.wait (%p530_p13), [#allocation10], 16  }
 0x2f2   : > { %681 = vsyncadd (%p530_p13), [#allocation10], 4294967280 }
 0x2f3 PF: > { %s17_s11 = sadd.s32 1, %s692_s11   ;;  %s803_s9 = smov %s688_s10 }
 0x2f4   : > { %p14_p0 = scmp.ge.s32.totalorder %s17_s11, 4   ;;  %s804_s10 = smov %s806_s13 }
 0x2f6   :  { %16 = sbr.rel (!%p14_p0) target bundleno = 5 (0x5), region = 94 }
 0x2fb   :  { %421 = vsyncpa [#allocation9], 1 }
 0x2fc   :  { %423 = vsyncpa [#allocation9 + $0x1], 1 }
 0x2fd   :  { %424 = vsyncpa [#allocation12], 1 }
 0x2fe   :  { %425 = vsyncpa [#allocation10], 1 }
 0x2ff   :  { %427 = vsyncpa [#allocation10 + $0x1], 1 }

</bundles_post_ra>
